<compile_context>
chip_gen: v5e
topology: v5e:2x2
jax: 0.10.0
libtpu: 0.0.40
codegen_flags: <defaults>
</compile_context>

<pallas_src>
import functools

import jax
import jax.numpy as jnp
from jax import lax
from jax.experimental import pallas as pl
from jax.experimental.pallas import tpu as pltpu


def _rbm_fwd_kernel(x_ref, w_ref, hb_ref, vb_ref, u_ref, eps_ref, out_ref, *,
                    noise):
    # x streamed as f32, cast to bf16 in-kernel (VPU op, hidden under the MXU).
    x = x_ref[...].astype(jnp.bfloat16)                       # (TB, nv)
    w = w_ref[...]                                            # (nh, nv) bf16, single copy

    # hidden pre-activation on the MXU: x @ W.T (contract over n_visible),
    # f32 accumulation.
    logits_h = lax.dot_general(
        x, w,
        dimension_numbers=(((1,), (1,)), ((), ())),
        preferred_element_type=jnp.float32) + hb_ref[...]
    prob_h = jax.nn.sigmoid(logits_h)                         # (TB, nh) f32

    # Bernoulli sample: h = 1[u < p]  (exactly torch.bernoulli semantics).
    h = (u_ref[...] < prob_h).astype(jnp.bfloat16)            # (TB, nh)

    # visible reconstruction on the MXU: h @ W, f32 accumulation.
    mu = jnp.dot(h, w, preferred_element_type=jnp.float32) + vb_ref[...]

    # x_sample = mu + N(0,1) * noise
    out_ref[...] = mu + eps_ref[...] * noise


def _round_up(v, m):
    return (v + m - 1) // m * m


def rbm_forward(x, W, h_bias, v_bias, key, noise=0.01):
    """Fused RBM forward: x -> sample_h -> bernoulli -> sample_v -> + noise."""
    B, nv = x.shape
    nh = W.shape[0]

    # ---- batch tiling ------------------------------------------------------
    # big batches: large tiles (amortize ~0.35us/step); small batches: at least
    # two tiles when possible so both v7x TensorCores get work.
    if B >= 1024:
        tb = 512
    elif B >= 512:
        tb = 256
    elif B >= 16:
        tb = max(8, _round_up((B + 1) // 2, 8))
    else:
        tb = max(8, _round_up(B, 8))
    pB = _round_up(B, tb)
    grid = (pB // tb,)

    xp = x.astype(jnp.float32)
    if pB != B:
        xp = jnp.pad(xp, ((0, pB - B), (0, 0)))

    w_bf = W.astype(jnp.bfloat16)                 # (nh, nv) -- single resident copy
    hb = h_bias.reshape(1, nh).astype(jnp.float32)
    vb = v_bias.reshape(1, nv).astype(jnp.float32)

    # randomness generated once outside the kernel (portable; see header note)
    k_u, k_n = jax.random.split(key)
    u = jax.random.uniform(k_u, (pB, nh), dtype=jnp.float32)
    eps = jax.random.normal(k_n, (pB, nv), dtype=jnp.float32)

    # ---- explicit VMEM budget ---------------------------------------------
    vmem_limit = (
        2 * nh * nv * 2                 # W (bf16), pipeline double-buffer
        + 2 * tb * nv * 4 * 3           # x / eps / out tiles (f32), double-buffered
        + 2 * tb * nh * 4               # uniform tile (f32), double-buffered
        + 6 * tb * (nh + nv) * 4        # f32 intermediates / headroom
        + (4 << 20)
    )
    # 48 MiB leaves headroom under v7x's 64 MiB/TC; v5e/v6e (128 MiB) could go
    # higher for much larger nh*nv models.
    vmem_limit = int(min(max(vmem_limit, 16 << 20), 48 << 20))

    cost = pl.CostEstimate(
        flops=2 * 2 * pB * nv * nh,                         # two matmuls
        transcendentals=pB * nh,                            # sigmoid
        bytes_accessed=(pB * nv * 4) * 3 + pB * nh * 4 + nh * nv * 2,
    )

    out = pl.pallas_call(
        functools.partial(_rbm_fwd_kernel, noise=float(noise)),
        out_shape=jax.ShapeDtypeStruct((pB, nv), jnp.float32),
        grid=grid,
        in_specs=[
            pl.BlockSpec((tb, nv), lambda i: (i, 0)),       # x      (batch tiled)
            pl.BlockSpec((nh, nv), lambda i: (0, 0)),       # W      (VMEM resident)
            pl.BlockSpec((1, nh), lambda i: (0, 0)),        # h_bias (VMEM resident)
            pl.BlockSpec((1, nv), lambda i: (0, 0)),        # v_bias (VMEM resident)
            pl.BlockSpec((tb, nh), lambda i: (i, 0)),       # bernoulli uniforms
            pl.BlockSpec((tb, nv), lambda i: (i, 0)),       # gaussian eps
        ],
        out_specs=pl.BlockSpec((tb, nv), lambda i: (i, 0)),
        compiler_params=pltpu.CompilerParams(
            dimension_semantics=("parallel",),
            vmem_limit_bytes=vmem_limit,
        ),
        cost_estimate=cost,
    )(xp, w_bf, hb, vb, u, eps)

    return out[:B] if pB != B else out


# TODO(synk): contrastive_divergence (training update) is not part of forward()
# and is not ported; fusing k Gibbs steps into one kernel (lax.fori_loop with W
# resident) is the natural follow-up for CD-k at tiny batch sizes.


if __name__ == "__main__":
    # small shapes consistent with the module: n_visible=256, n_hidden=128, batch=8
    B, n_visible, n_hidden = 8, 256, 128

    key = jax.random.PRNGKey(0)
    k_w, k_x, k_fwd = jax.random.split(key, 3)

    # deterministic parameter init (matches __init__: randn*0.01, zero biases)
    W = jax.random.normal(k_w, (n_hidden, n_visible), dtype=jnp.float32) * 0.01
    h_bias = jnp.zeros((n_hidden,), dtype=jnp.float32)
    v_bias = jnp.zeros((n_visible,), dtype=jnp.float32)

    # example visible input (binary-ish, like RBM visible units)
    x = (jax.random.uniform(k_x, (B, n_visible)) < 0.5).astype(jnp.float32)

    x_sample = rbm_forward(x, W, h_bias, v_bias, k_fwd, noise=0.01)
    jax.block_until_ready(x_sample)

    assert x_sample.shape == (B, n_visible)
    assert x_sample.dtype == jnp.float32
    assert bool(jnp.all(jnp.isfinite(x_sample)))
    print("KERNEL_OK")
</pallas_src>

<mosaic_0001>
module attributes {stable_mosaic.version = 11 : i64} {
  func.func @_rbm_fwd_kernel(%arg0: i32, %arg1: memref<8x256xf32, #tpu.memory_space<vmem>>, %arg2: memref<128x256xbf16, #tpu.memory_space<vmem>>, %arg3: memref<1x128xf32, #tpu.memory_space<vmem>>, %arg4: memref<1x256xf32, #tpu.memory_space<vmem>>, %arg5: memref<8x128xf32, #tpu.memory_space<vmem>>, %arg6: memref<8x256xf32, #tpu.memory_space<vmem>>, %arg7: memref<8x256xf32, #tpu.memory_space<vmem>>) attributes {dimension_semantics = [#tpu.dimension_semantics<parallel>], iteration_bounds = array<i64: 1>, scalar_prefetch = 0 : i64, scratch_operands = 0 : i64, tpu.core_type = #tpu.core_type<tc>, window_params = [{transform_indices = @transform_0, window_bounds = array<i64: 8, 256>}, {pipeline_mode = #tpu.pipeline_mode<synchronous>, transform_indices = @transform_1, window_bounds = array<i64: 128, 256>}, {pipeline_mode = #tpu.pipeline_mode<synchronous>, transform_indices = @transform_2, window_bounds = array<i64: 1, 128>}, {pipeline_mode = #tpu.pipeline_mode<synchronous>, transform_indices = @transform_3, window_bounds = array<i64: 1, 256>}, {transform_indices = @transform_4, window_bounds = array<i64: 8, 128>}, {transform_indices = @transform_5, window_bounds = array<i64: 8, 256>}, {transform_indices = @transform_6, window_bounds = array<i64: 8, 256>}]} {
    %c0 = arith.constant 0 : index
    %c0_0 = arith.constant 0 : index
    %0 = vector.load %arg1[%c0, %c0_0] : memref<8x256xf32, #tpu.memory_space<vmem>>, vector<8x256xf32>
    %1 = arith.truncf %0 : vector<8x256xf32> to vector<8x256xbf16>
    %c0_1 = arith.constant 0 : index
    %c0_2 = arith.constant 0 : index
    %2 = vector.load %arg2[%c0_1, %c0_2] : memref<128x256xbf16, #tpu.memory_space<vmem>>, vector<128x256xbf16>
    %cst = arith.constant dense<0.000000e+00> : vector<8x128xf32>
    %3 = tpu.matmul %1, %2, %cst {dimension_numbers = #tpu.dot_dimension_numbers<[1], [1], [0], [0], [0, 0, 1, 0], [], []>} : vector<8x256xbf16>, vector<128x256xbf16>, vector<8x128xf32> -> vector<8x128xf32>
    %c0_3 = arith.constant 0 : index
    %c0_4 = arith.constant 0 : index
    %4 = vector.load %arg3[%c0_3, %c0_4] : memref<1x128xf32, #tpu.memory_space<vmem>>, vector<1x128xf32>
    %5 = vector.broadcast %4 : vector<1x128xf32> to vector<8x128xf32>
    %6 = arith.addf %3, %5 : vector<8x128xf32>
    %7 = arith.negf %6 : vector<8x128xf32>
    %8 = math.exp %7 : vector<8x128xf32>
    %cst_5 = arith.constant 1.000000e+00 : f32
    %9 = vector.broadcast %cst_5 : f32 to vector<8x128xf32>
    %10 = arith.addf %9, %8 : vector<8x128xf32>
    %11 = arith.divf %9, %10 : vector<8x128xf32>
    %c0_6 = arith.constant 0 : index
    %c0_7 = arith.constant 0 : index
    %12 = vector.load %arg5[%c0_6, %c0_7] : memref<8x128xf32, #tpu.memory_space<vmem>>, vector<8x128xf32>
    %13 = arith.cmpf olt, %12, %11 : vector<8x128xf32>
    %14 = arith.extui %13 : vector<8x128xi1> to vector<8x128xi32>
    %15 = arith.sitofp %14 : vector<8x128xi32> to vector<8x128xf32>
    %16 = arith.truncf %15 : vector<8x128xf32> to vector<8x128xbf16>
    %cst_8 = arith.constant dense<0.000000e+00> : vector<8x256xf32>
    %17 = tpu.matmul %16, %2, %cst_8 {dimension_numbers = #tpu.dot_dimension_numbers<[1], [0], [0], [1], [0, 0, 1, 1], [], []>} : vector<8x128xbf16>, vector<128x256xbf16>, vector<8x256xf32> -> vector<8x256xf32>
    %c0_9 = arith.constant 0 : index
    %c0_10 = arith.constant 0 : index
    %18 = vector.load %arg4[%c0_9, %c0_10] : memref<1x256xf32, #tpu.memory_space<vmem>>, vector<1x256xf32>
    %19 = vector.broadcast %18 : vector<1x256xf32> to vector<8x256xf32>
    %20 = arith.addf %17, %19 : vector<8x256xf32>
    %c0_11 = arith.constant 0 : index
    %c0_12 = arith.constant 0 : index
    %21 = vector.load %arg6[%c0_11, %c0_12] : memref<8x256xf32, #tpu.memory_space<vmem>>, vector<8x256xf32>
    %cst_13 = arith.constant 0.00999999977 : f32
    %22 = vector.broadcast %cst_13 : f32 to vector<8x256xf32>
    %23 = arith.mulf %21, %22 : vector<8x256xf32>
    %24 = arith.addf %20, %23 : vector<8x256xf32>
    %c0_14 = arith.constant 0 : index
    %c0_15 = arith.constant 0 : index
    %25 = vector.load %arg7[%c0_14, %c0_15] : memref<8x256xf32, #tpu.memory_space<vmem>>, vector<8x256xf32>
    tpu.vector_store %arg7[%c0_14, %c0_15], %24 {strides = array<i32>} : memref<8x256xf32, #tpu.memory_space<vmem>>, vector<8x256xf32>,
    return
  }
  func.func @transform_0(%arg0: i32) -> (i32, i32) {
    %c0_i32 = arith.constant 0 : i32
    %c0_i32_0 = arith.constant 0 : i32
    return %arg0, %c0_i32 : i32, i32
  }
  func.func @transform_1(%arg0: i32) -> (i32, i32) {
    %c0_i32 = arith.constant 0 : i32
    %c0_i32_0 = arith.constant 0 : i32
    %c0_i32_1 = arith.constant 0 : i32
    return %c0_i32, %c0_i32_0 : i32, i32
  }
  func.func @transform_2(%arg0: i32) -> (i32, i32) {
    %c0_i32 = arith.constant 0 : i32
    %c0_i32_0 = arith.constant 0 : i32
    %c0_i32_1 = arith.constant 0 : i32
    return %c0_i32, %c0_i32_0 : i32, i32
  }
  func.func @transform_3(%arg0: i32) -> (i32, i32) {
    %c0_i32 = arith.constant 0 : i32
    %c0_i32_0 = arith.constant 0 : i32
    %c0_i32_1 = arith.constant 0 : i32
    return %c0_i32, %c0_i32_0 : i32, i32
  }
  func.func @transform_4(%arg0: i32) -> (i32, i32) {
    %c0_i32 = arith.constant 0 : i32
    %c0_i32_0 = arith.constant 0 : i32
    return %arg0, %c0_i32 : i32, i32
  }
  func.func @transform_5(%arg0: i32) -> (i32, i32) {
    %c0_i32 = arith.constant 0 : i32
    %c0_i32_0 = arith.constant 0 : i32
    return %arg0, %c0_i32 : i32, i32
  }
  func.func @transform_6(%arg0: i32) -> (i32, i32) {
    %c0_i32 = arith.constant 0 : i32
    %c0_i32_0 = arith.constant 0 : i32
    return %arg0, %c0_i32 : i32, i32
  }
}

</mosaic_0001>

<bundles_post_ra>
// kernel: tpu_custom_call.1
= control target key start
LH: loop header
LB: loop body
LE: loop exit
PB: predicated region body
PF: predicated region fallthrough
CT: control target
= control target key end

     0   :  { %11 = vsyncpa [#allocation3], 0  ;;  %s624_s0 = inlined_call_operand.hbm [shape: f32[8,256], index: 0, kind: input, shape index: {}]   ;;  %s625_s1 = inlined_call_operand.hbm [shape: bf16[128,256], index: 1, kind: input, shape index: {}]   ;;  %s626_s2 = inlined_call_operand.hbm [shape: f32[1,128], index: 2, kind: input, shape index: {}]   ;;  %s627_s3 = inlined_call_operand.vmem [shape: f32[1,256], index: 3, kind: input, shape index: {}]   ;;  %s628_s4 = inlined_call_operand.hbm [shape: f32[8,128], index: 4, kind: input, shape index: {}]   ;;  %s629_s5 = inlined_call_operand.hbm [shape: f32[8,256], index: 5, kind: input, shape index: {}]   ;;  %s630_s6 = inlined_call_operand.hbm [shape: f32[8,256], index: 6, kind: output, shape index: {}]  }
   0x1   :  { %12 = vsyncpa [#allocation6], 0 }
   0x2   :  { %13 = vsyncpa [#allocation9], 0  ;;  %s30_s23 = sshll.u32 %s625_s1, 4  ;;  %s31_s23 = int_to_ptr.hbm [resolvable:$true] %s30_s23 }
   0x3   :  { %14 = vsyncpa [#allocation4], 0  ;;  %s559_s24 = smov [#allocation5]   ;;  %s57_s28 = sshll.u32 %s628_s4, 4  ;;  %s58_s28 = int_to_ptr.hbm [resolvable:$true] %s57_s28 }
   0x4   :  { %s32_s25 = sshll.u32 %s559_s24, 4  ;;  %s560_s29 = smov 128   ;;  %s33_s25 = int_to_ptr.vmem [resolvable:$true] %s32_s25 }
   0x5   :  { %s561_s30 = smov 8   ;;  %s562_s7 = smov [#allocation8]  }
   0x6   :  { %38 = dma.hbm_to_vmem [thread:$0]  %s31_s23, 2048, %s33_s25, [#allocation6], %s560_s29, %s560_s29, %s561_s30  }
   0x7   :  { %s59_s8 = sshll.u32 %s562_s7, 4  ;;  %s20_s11 = sshll.u32 %s624_s0, 4  ;;  %s60_s8 = int_to_ptr.vmem [resolvable:$true] %s59_s8  ;;  %s21_s11 = int_to_ptr.hbm [resolvable:$true] %s20_s11 }
   0x8   :  { %62 = dma.hbm_to_vmem [thread:$0]  %s58_s28, 128, %s60_s8, [#allocation9]  }
   0x9   :  { %s44_s13 = sshll.u32 %s626_s2, 4  ;;  %s563_s14 = smov [#allocation2]   ;;  %s45_s13 = int_to_ptr.hbm [resolvable:$true] %s44_s13 }
   0xa   :  { %s22_s15 = sshll.u32 %s563_s14, 4  ;;  %s564_s4 = smov [#allocation7]   ;;  %s23_s15 = int_to_ptr.vmem [resolvable:$true] %s22_s15 }
   0xb   :  { %25 = dma.hbm_to_vmem [thread:$0]  %s21_s11, 256, %s23_s15, [#allocation3]  }
   0xc   :  { %s46_s16 = sshll.u32 %s564_s4, 4  ;;  %s68_s19 = sshll.u32 %s629_s5, 4  ;;  %s47_s16 = int_to_ptr.vmem [resolvable:$true] %s46_s16  ;;  %s69_s19 = int_to_ptr.hbm [resolvable:$true] %s68_s19 }
   0xd   :  { %49 = dma.hbm_to_vmem [thread:$0]  %s45_s13, 16, %s47_s16, [#allocation6]  }
   0xe   :  { %s565_s0 = smov [#allocation10]  }
   0xf   :  { %s70_s20 = sshll.u32 %s565_s0, 4  ;;  %s71_s20 = int_to_ptr.vmem [resolvable:$true] %s70_s20 }
  0x10   :  { %73 = dma.hbm_to_vmem [thread:$0]  %s69_s19, 256, %s71_s20, [#allocation9]  }
  0x11   :  { %551 = dma.done.wait [#allocation3], 256  }
  0x12   :  { %552 = vsyncadd [#allocation3], 4294967040 }
  0x13   :  { %553 = dma.done.wait [#allocation6], 2064  }
  0x14   :  { %554 = vsyncadd [#allocation6], 4294965232 }
  0x15   :  { %555 = dma.done.wait [#allocation9], 384  }
  0x16   :  { %556 = vsyncadd [#allocation9], 4294966912  ;;  %v365_v0 = vld [vmem:[#allocation5 + $0x70] sm:$0xf]  ;;  %v392_v1 = vld [vmem:[#allocation5 + $0x74] sm:$0xf0] }
  0x17   :  { %v391_v2 = vld [vmem:[#allocation5 + $0x74] sm:$0xf]  ;;  %v366_v3 = vor.u32 %v392_v1, %v365_v0  ;;  %v367_v4 = vld [vmem:[#allocation5 + $0x78] sm:$0xf0]  ;;  %v357_v6 = vld [vmem:[#allocation5 + $0x60] sm:$0xf] }
  0x18   :  { %v370_v5 = vor.u32 %v391_v2, %v367_v4  ;;  %v390_v7 = vld [vmem:[#allocation5 + $0x64] sm:$0xf0]  ;;  %v389_v8 = vld [vmem:[#allocation5 + $0x64] sm:$0xf]  ;;  %v359_v9 = vld [vmem:[#allocation5 + $0x68] sm:$0xf0] }
  0x19   :  { %198 = vmatpush.bf16.xpose.msra.mxu0 %v366_v3  ;;  %254 = vmatpush.bf16.msra.mxu2 %v366_v3  ;;  %v358_v10 = vor.u32 %v390_v7, %v357_v6  ;;  %v362_v11 = vor.u32 %v389_v8, %v359_v9  ;;  %v349_v12 = vld [vmem:[#allocation5 + $0x50] sm:$0xf]  ;;  %v388_v13 = vld [vmem:[#allocation5 + $0x54] sm:$0xf0]  ;;  %v387_v14 = vld [vmem:[#allocation5 + $0x54] sm:$0xf] }
  0x1a   :  { %211 = vmatpush.bf16.xpose.msra.mxu1 %v370_v5  ;;  %267 = vmatpush.bf16.msra.mxu3 %v370_v5  ;;  %v351_v15 = vld [vmem:[#allocation5 + $0x58] sm:$0xf0]  ;;  %v350_v16 = vor.u32 %v388_v13, %v349_v12  ;;  %v341_v18 = vld [vmem:[#allocation5 + $0x40] sm:$0xf]  ;;  %v386_v19 = vld [vmem:[#allocation5 + $0x44] sm:$0xf0] }
  0x1b   :  { %v354_v17 = vor.u32 %v387_v14, %v351_v15  ;;  %v385_v20 = vld [vmem:[#allocation5 + $0x44] sm:$0xf]  ;;  %v343_v21 = vld [vmem:[#allocation5 + $0x48] sm:$0xf0]  ;;  %v342_v22 = vor.u32 %v386_v19, %v341_v18  ;;  %v333_v24 = vld [vmem:[#allocation5 + $0x30] sm:$0xf] }
  0x1c   :  { %v346_v23 = vor.u32 %v385_v20, %v343_v21  ;;  %v384_v25 = vld [vmem:[#allocation5 + $0x34] sm:$0xf0]  ;;  %v383_v26 = vld [vmem:[#allocation5 + $0x34] sm:$0xf]  ;;  %v335_v27 = vld [vmem:[#allocation5 + $0x38] sm:$0xf0] }
  0x1d   :  { %255 = vmatpush.bf16.msra.mxu2 %v358_v10  ;;  %v334_v28 = vor.u32 %v384_v25, %v333_v24  ;;  %v338_v29 = vor.u32 %v383_v26, %v335_v27  ;;  %v325_v30 = vld [vmem:[#allocation5 + $0x20] sm:$0xf]  ;;  %v382_v31 = vld [vmem:[#allocation5 + $0x24] sm:$0xf0]  ;;  %v381_v32 = vld [vmem:[#allocation5 + $0x24] sm:$0xf] }
  0x1e   :  { %268 = vmatpush.bf16.msra.mxu3 %v362_v11  ;;  %v327_v33 = vld [vmem:[#allocation5 + $0x28] sm:$0xf0]  ;;  %v326_v34 = vor.u32 %v382_v31, %v325_v30  ;;  %v317_v36 = vld [vmem:[#allocation5 + $0x10] sm:$0xf]  ;;  %v380_v37 = vld [vmem:[#allocation5 + $0x14] sm:$0xf0] }
  0x1f   :  { %v330_v35 = vor.u32 %v381_v32, %v327_v33  ;;  %v379_v38 = vld [vmem:[#allocation5 + $0x14] sm:$0xf]  ;;  %v319_v39 = vld [vmem:[#allocation5 + $0x18] sm:$0xf0]  ;;  %v318_v40 = vor.u32 %v380_v37, %v317_v36  ;;  %v309_v42 = vld [vmem:[#allocation5] sm:$0xf] }
  0x20   :  { %v322_v41 = vor.u32 %v379_v38, %v319_v39  ;;  %v378_v43 = vld [vmem:[#allocation5 + $0x4] sm:$0xf0]  ;;  %v377_v44 = vld [vmem:[#allocation5 + $0x4] sm:$0xf]  ;;  %v311_v45 = vld [vmem:[#allocation5 + $0x8] sm:$0xf0] }
  0x21   :  { %199 = vmatpush.bf16.xpose.msra.mxu0 %v358_v10  ;;  %256 = vmatpush.bf16.msra.mxu2 %v350_v16  ;;  %v310_v46 = vor.u32 %v378_v43, %v309_v42  ;;  %v314_v47 = vor.u32 %v377_v44, %v311_v45  ;;  %v94_v48 = vld [vmem:[#allocation2] sm:$0xff]  ;;  %v95_v49 = vld [vmem:[#allocation2 + $0x8] sm:$0xff]  ;;  %v402_v52 = vld [vmem:[#allocation7] ss:$0 sm:$0xff]  ;;  %v566_v9 = vmov 1.0|1.0  }
  0x22   :  { %212 = vmatpush.bf16.xpose.msra.mxu1 %v362_v11  ;;  %269 = vmatpush.bf16.msra.mxu3 %v354_v17  ;;  %v96_v50 = vpack.c.bf16 %v94_v48, %v94_v48  ;;  %v97_v51 = vpack.c.bf16 %v95_v49, %v95_v49  ;;  %v243_v6 = vld [vmem:[#allocation8] sm:$0xff]  ;;  %v248_v10 = vld [vmem:[%s627_s3] sm:$0x3]  ;;  %v281_v12 = vld [vmem:[#allocation10 + $0x8] sm:$0xff]  ;;  %s567_s21 = smov [#allocation11]   ;;  %s295_s25 = sshll.u32 %s630_s6, 4  ;;  %s296_s25 = int_to_ptr.hbm [resolvable:$true] %s295_s25 }
  0x23   :  { %v280_v11 = vld [vmem:[#allocation10] sm:$0xff]  ;;  %v250_v13 = vperm.slane %v248_v10, 0  ;;  %v251_v14 = vperm.slane %v248_v10, 1  ;;  %s293_s22 = sshll.u32 %s567_s21, 4  ;;  %s294_s22 = int_to_ptr.vmem [resolvable:$true] %s293_s22 }
  0x24   :  { %v282_v15 = vmul.f32 0.01, %v280_v11 }
  0x25   :  { %257 = vmatpush.bf16.msra.mxu2 %v342_v22 }
  0x26   :  { %270 = vmatpush.bf16.msra.mxu3 %v346_v23 }
  0x29   :  { %200 = vmatpush.bf16.xpose.msra.mxu0 %v350_v16  ;;  %258 = vmatpush.bf16.msra.mxu2 %v334_v28  ;;  %v283_v16 = vmul.f32 0.01, %v281_v12 }
  0x2a   :  { %213 = vmatpush.bf16.xpose.msra.mxu1 %v354_v17  ;;  %271 = vmatpush.bf16.msra.mxu3 %v338_v29 }
  0x2d   :  { %259 = vmatpush.bf16.msra.mxu2 %v326_v34 }
  0x2e   :  { %272 = vmatpush.bf16.msra.mxu3 %v330_v35 }
  0x31   :  { %201 = vmatpush.bf16.xpose.msra.mxu0 %v342_v22  ;;  %260 = vmatpush.bf16.msra.mxu2 %v318_v40 }
  0x32   :  { %214 = vmatpush.bf16.xpose.msra.mxu1 %v346_v23  ;;  %273 = vmatpush.bf16.msra.mxu3 %v322_v41 }
  0x35   :  { %261 = vmatpush.bf16.msra.mxu2 %v310_v46 }
  0x36   :  { %274 = vmatpush.bf16.msra.mxu3 %v314_v47 }
  0x39   :  { %202 = vmatpush.bf16.xpose.msra.mxu0 %v334_v28 }
  0x3a   :  { %215 = vmatpush.bf16.xpose.msra.mxu1 %v338_v29 }
  0x41   :  { %203 = vmatpush.bf16.xpose.msra.mxu0 %v326_v34 }
  0x42   :  { %216 = vmatpush.bf16.xpose.msra.mxu1 %v330_v35 }
  0x49   :  { %204 = vmatpush.bf16.xpose.msra.mxu0 %v318_v40 }
  0x4a   :  { %217 = vmatpush.bf16.xpose.msra.mxu1 %v322_v41 }
  0x51   :  { %205 = vmatpush.bf16.xpose.msra.mxu0 %v310_v46 }
  0x52   :  { %218 = vmatpush.bf16.xpose.msra.mxu1 %v314_v47 }
  0x58   :  { %206 = vmatmul.bf16.vlgmr.msra.gmra.mxu0 %v96_v50 }
  0x59   :  { %219 = vmatmul.bf16.vlgmr.msra.gmra.mxu1 %v97_v51 }
  0xd5   :  { %v207_v53 = vpop.f32.mrf.mxu0 }
  0xd6   :  { %v208_v54 = vadd.f32 %v402_v52, %v207_v53  ;;  %v220_v55 = vpop.f32.mrf.mxu1 }
  0xd8   :  { %v221_v56 = vadd.f32 %v220_v55, %v208_v54 }
  0xda   :  { %v371_v57 = vmul.f32 -1.442695, %v221_v56 }
  0xdc   :  { %403 = vpow2.f32 %v371_v57 }
  0xdd   :  { %v209_v58 = vpop.f32.mrf.mxu0 }
  0xde   :  { %v222_v59 = vpop.f32.mrf.mxu1 }
  0xe2   :  { %v404_v60 = vpop.eup %403 }
  0xe3   :  { %v227_v61 = vadd.f32 1.0, %v404_v60 }
  0xe5   :  { %405 = vrcp.f32 %v227_v61  ;;  %v239_v1 = vand.u32 2147483648, %v227_v61  ;;  %v237_v3 = vand.u32 2147483647, %v227_v61  ;;  %vm233_vm1 = vweird.f32 %v227_v61 }
  0xe7   :  { %v240_v5 = vor.u32 1.1754944e-38, %v239_v1  ;;  %vm238_vm3 = vcmp.eq.f32.partialorder %v237_v3, 8.507059e+37 }
  0xeb   :  { %v406_v62 = vpop.eup %405 }
  0xec   :  { %v229_v63 = vmul.f32 %v406_v62, %v227_v61  ;;  %vm234_vm0 = vweird.f32 %v406_v62 }
  0xed   :  { %vm235_vm2 = vmor %vm233_vm1, %vm234_vm0 }
  0xee   :  { %v230_v0 = vsub.f32 1.0, %v229_v63 }
  0xf0   :  { %v231_v2 = vmul.f32 %v406_v62, %v230_v0 }
  0xf2   :  { %v232_v4 = vadd.f32 %v406_v62, %v231_v2 }
  0xf4   :  { %v236_v7 = vsel %vm235_vm2, %v406_v62, %v232_v4 }
  0xf5   :  { %v241_v8 = vsel %vm238_vm3, %v240_v5, %v236_v7 }
  0xf6   :  { %vm244_vm4 = vcmp.lt.f32.partialorder %v243_v6, %v241_v8 }
  0xf7   :  { %vm373_vm5 = vmpackc.low %vm244_vm4, %vm244_vm4 }
  0xf8   :  { %374 = vmatmul.msk.bf16.vlgmr.msra.gmra.mxu2 %vm373_vm5, %v566_v9  ;;  %376 = vmatmul.msk.bf16.vlgmr.msra.gmra.mxu3 %vm373_vm5, %v566_v9 }
 0x17b   :  { %v263_v17 = vpop.f32.mrf.mxu2  ;;  %v276_v18 = vpop.f32.mrf.mxu3 }
 0x17c   :  { %v264_v19 = vadd.f32 %v263_v17, %v250_v13  ;;  %v277_v20 = vadd.f32 %v276_v18, %v251_v14 }
 0x17e   :  { %v284_v21 = vadd.f32 %v282_v15, %v264_v19  ;;  %v285_v22 = vadd.f32 %v283_v16, %v277_v20 }
 0x180   :  { %286 = vst [vmem:[#allocation11] sm:$0xff] %v284_v21 }
 0x181   :  { %287 = vst [vmem:[#allocation11 + $0x8] sm:$0xff] %v285_v22 }
 0x182   :  { %298 = dma.vmem_to_hbm [thread:$0]  %s294_s22, 256, %s296_s25, [#allocation4]  }
 0x183   :  { %v265_v23 = vpop.f32.mrf.mxu2  ;;  %v278_v24 = vpop.f32.mrf.mxu3 }
 0x184   :  { %557 = dma.done.wait [#allocation4], 256  }
 0x185   :  { %558 = vsyncadd [#allocation4], 4294967040 }
 0x186   :  { %303 = vsyncpa [#allocation3], 1 }
 0x187   :  { %304 = vsyncpa [#allocation6], 1 }
 0x188   :  { %305 = vsyncpa [#allocation9], 1 }
 0x189   :  { %306 = vsyncpa [#allocation4], 1 }

</bundles_post_ra>
